<compile_context>
chip_gen: v7x
topology: tpu7x:2x2x1
jax: 0.10.0
libtpu: 0.0.40
codegen_flags: <defaults>
</compile_context>

<pallas_src>
import functools
import math

import jax
import jax.numpy as jnp
import numpy as np
from jax import lax
from jax.experimental import pallas as pl
from jax.experimental.pallas import tpu as pltpu


# ----------------------------------------------------------------------------
# Gaussian kernel construction (replicates cv2.getGaussianKernel for sigma > 0)
# ----------------------------------------------------------------------------
def _cv2_gaussian_kernel_1d(ksize: int, sigma: float) -> np.ndarray:
    if sigma <= 0:
        sigma = 0.3 * ((ksize - 1) * 0.5 - 1) + 0.8
    x = np.arange(ksize, dtype=np.float64) - (ksize - 1) * 0.5
    k = np.exp(-(x * x) / (2.0 * sigma * sigma))
    return k / k.sum()  # shape (ksize,)


def make_gaussian_kernel_2d(ksize: int, sigma: float) -> np.ndarray:
    k1 = _cv2_gaussian_kernel_1d(ksize, sigma)[:, None]
    return (k1 * k1.T).astype(np.float32)  # (k, k) — only used by the reference


# ----------------------------------------------------------------------------
# Pallas kernel: fused reflect pad + separable Gaussian blur on a channel block
# ----------------------------------------------------------------------------
def _gauss_sep_kernel(x_ref, o_ref, *, wts, H, W, pad):
    """x_ref: (NC_BLK, H, W) VMEM; o_ref: (NC_BLK, H, W) VMEM.

    wts: tuple of python floats (1-D Gaussian), baked in as constants.
    """
    k = len(wts)
    x = x_ref[...].astype(jnp.float32)  # (B, H, W)

    # --- reflect pad along W (lane axis): cols [pad..1], x, cols [W-2..W-1-pad]
    left = [x[:, :, c:c + 1] for c in range(pad, 0, -1)]
    right = [x[:, :, c:c + 1] for c in range(W - 2, W - 2 - pad, -1)]
    xp = jnp.concatenate(left + [x] + right, axis=2)  # (B, H, W + 2*pad)

    # --- horizontal 1-D pass (k taps, static lane slices) ---
    tmp = wts[0] * xp[:, :, 0:W]
    for j in range(1, k):
        tmp = tmp + wts[j] * xp[:, :, j:j + W]  # (B, H, W)

    # --- reflect pad along H (sublane axis) ---
    top = [tmp[:, r:r + 1, :] for r in range(pad, 0, -1)]
    bot = [tmp[:, r:r + 1, :] for r in range(H - 2, H - 2 - pad, -1)]
    tp = jnp.concatenate(top + [tmp] + bot, axis=1)  # (B, H + 2*pad, W)

    # --- vertical 1-D pass (k taps, static sublane slices) ---
    acc = wts[0] * tp[:, 0:H, :]
    for i in range(1, k):
        acc = acc + wts[i] * tp[:, i:i + H, :]  # (B, H, W)

    o_ref[...] = acc.astype(o_ref.dtype)


def _round_up(v: int, m: int) -> int:
    return ((v + m - 1) // m) * m


def _pick_nc_block(NC: int, H: int, W: int, dtype_bytes: int = 4,
                   vmem_budget: int = 8 << 20) -> int:
    """Pick channels-per-grid-step.

    Budget counts the double-buffered in + out VMEM blocks with (8,128) tile
    padding; 8 MiB is comfortably inside the scoped-VMEM default on every
    generation (v7x: 32 MiB scoped / 64 MiB physical; v5e/v6e: 128 MiB).
    Prefer >= 2 grid steps so the 'parallel' axis can use both v7x TensorCores.
    """
    per_channel = _round_up(H, 8) * _round_up(W, 128) * dtype_bytes
    cap = max(1, vmem_budget // (per_channel * 4))  # 2 bufs x (in + out)
    target = min(cap, max(1, NC // 2)) if NC >= 2 else 1
    for b in range(int(target), 0, -1):
        if NC % b == 0:
            return b
    return 1


def gaussian_smooth(x: jax.Array, ksize: int, sigma: float) -> jax.Array:
    """x: (N, C, H, W) float32 -> (N, C, H, W), same Gaussian per channel."""
    N, C, H, W = x.shape
    NC = N * C
    pad = (ksize - 1) // 2

    # 1-D separable weights baked in as Python float constants.
    wts = tuple(float(v) for v in _cv2_gaussian_kernel_1d(ksize, sigma))

    x_flat = x.reshape(NC, H, W)  # free reshape; reflect pad is fused in-kernel

    nc_blk = _pick_nc_block(NC, H, W, dtype_bytes=x.dtype.itemsize)
    grid = (NC // nc_blk,)

    kernel_fn = functools.partial(_gauss_sep_kernel, wts=wts, H=H, W=W, pad=pad)

    out_flat = pl.pallas_call(
        kernel_fn,
        out_shape=jax.ShapeDtypeStruct((NC, H, W), x.dtype),
        grid=grid,
        in_specs=[pl.BlockSpec((nc_blk, H, W), lambda n: (n, 0, 0))],
        out_specs=pl.BlockSpec((nc_blk, H, W), lambda n: (n, 0, 0)),
        compiler_params=pltpu.CompilerParams(
            dimension_semantics=("parallel",),
        ),
    )(x_flat)

    return out_flat.reshape(N, C, H, W)


# ----------------------------------------------------------------------------
# Pure-JAX reference: reflect pad + depthwise (grouped) conv, NCHW
# ----------------------------------------------------------------------------
def _reference(x: jax.Array, kernel_2d: np.ndarray) -> jax.Array:
    N, C, H, W = x.shape
    ksize = kernel_2d.shape[0]
    pad = (ksize - 1) // 2
    x_pad = jnp.pad(x, ((0, 0), (0, 0), (pad, pad), (pad, pad)), mode="reflect")
    w = jnp.broadcast_to(jnp.asarray(kernel_2d, jnp.float32), (C, 1, ksize, ksize))
    return lax.conv_general_dilated(
        x_pad, w, window_strides=(1, 1), padding="VALID",
        dimension_numbers=("NCHW", "OIHW", "NCHW"),
        feature_group_count=C,
        precision=lax.Precision.HIGHEST,
    )


if __name__ == "__main__":
    # Module config: channel=4, kernel_size=5, sigma=1.5, dim=2
    N, C, H, W = 2, 4, 16, 16
    kernel_size, sigma = 5, 1.5

    key = jax.random.PRNGKey(0)
    x = jax.random.normal(key, (N, C, H, W), dtype=jnp.float32)

    out = gaussian_smooth(x, kernel_size, sigma)
    out = jax.block_until_ready(out)

    kernel_2d = make_gaussian_kernel_2d(kernel_size, sigma)
    ref = jax.block_until_ready(_reference(x, kernel_2d))

    assert out.shape == (N, C, H, W)
    np.testing.assert_allclose(np.asarray(out), np.asarray(ref), atol=1e-5, rtol=1e-5)

    print("KERNEL_OK")
</pallas_src>

<mosaic_0001>
module attributes {stable_mosaic.version = 11 : i64} {
  func.func @_gauss_sep_kernel(%arg0: i32, %arg1: memref<4x16x16xf32, #tpu.memory_space<vmem>>, %arg2: memref<4x16x16xf32, #tpu.memory_space<vmem>>) attributes {dimension_semantics = [#tpu.dimension_semantics<parallel>], iteration_bounds = array<i64: 2>, scalar_prefetch = 0 : i64, scratch_operands = 0 : i64, tpu.core_type = #tpu.core_type<tc>, window_params = [{transform_indices = @transform_0, window_bounds = array<i64: 4, 16, 16>}, {transform_indices = @transform_1, window_bounds = array<i64: 4, 16, 16>}]} {
    %c0 = arith.constant 0 : index
    %c0_0 = arith.constant 0 : index
    %c0_1 = arith.constant 0 : index
    %0 = vector.load %arg1[%c0, %c0_0, %c0_1] : memref<4x16x16xf32, #tpu.memory_space<vmem>>, vector<4x16x16xf32>
    %1 = vector.extract_strided_slice %0 {offsets = [0, 0, 2], sizes = [4, 16, 1], strides = [1, 1, 1]} : vector<4x16x16xf32> to vector<4x16x1xf32>
    %2 = vector.extract_strided_slice %0 {offsets = [0, 0, 1], sizes = [4, 16, 1], strides = [1, 1, 1]} : vector<4x16x16xf32> to vector<4x16x1xf32>
    %3 = vector.extract_strided_slice %0 {offsets = [0, 0, 14], sizes = [4, 16, 1], strides = [1, 1, 1]} : vector<4x16x16xf32> to vector<4x16x1xf32>
    %4 = vector.extract_strided_slice %0 {offsets = [0, 0, 13], sizes = [4, 16, 1], strides = [1, 1, 1]} : vector<4x16x16xf32> to vector<4x16x1xf32>
    %5 = tpu.concatenate %1, %2, %0, %3, %4 in 2 : vector<4x16x1xf32>, vector<4x16x1xf32>, vector<4x16x16xf32>, vector<4x16x1xf32>, vector<4x16x1xf32> -> vector<4x16x20xf32>
    %6 = vector.extract_strided_slice %5 {offsets = [0, 0, 0], sizes = [4, 16, 16], strides = [1, 1, 1]} : vector<4x16x20xf32> to vector<4x16x16xf32>
    %cst = arith.constant 0.120078385 : f32
    %7 = vector.broadcast %cst : f32 to vector<4x16x16xf32>
    %8 = arith.mulf %7, %6 : vector<4x16x16xf32>
    %9 = vector.extract_strided_slice %5 {offsets = [0, 0, 1], sizes = [4, 16, 16], strides = [1, 1, 1]} : vector<4x16x20xf32> to vector<4x16x16xf32>
    %cst_2 = arith.constant 0.233880758 : f32
    %10 = vector.broadcast %cst_2 : f32 to vector<4x16x16xf32>
    %11 = arith.mulf %10, %9 : vector<4x16x16xf32>
    %12 = arith.addf %8, %11 : vector<4x16x16xf32>
    %13 = vector.extract_strided_slice %5 {offsets = [0, 0, 2], sizes = [4, 16, 16], strides = [1, 1, 1]} : vector<4x16x20xf32> to vector<4x16x16xf32>
    %cst_3 = arith.constant 0.292081714 : f32
    %14 = vector.broadcast %cst_3 : f32 to vector<4x16x16xf32>
    %15 = arith.mulf %14, %13 : vector<4x16x16xf32>
    %16 = arith.addf %12, %15 : vector<4x16x16xf32>
    %17 = vector.extract_strided_slice %5 {offsets = [0, 0, 3], sizes = [4, 16, 16], strides = [1, 1, 1]} : vector<4x16x20xf32> to vector<4x16x16xf32>
    %cst_4 = arith.constant 0.233880758 : f32
    %18 = vector.broadcast %cst_4 : f32 to vector<4x16x16xf32>
    %19 = arith.mulf %18, %17 : vector<4x16x16xf32>
    %20 = arith.addf %16, %19 : vector<4x16x16xf32>
    %21 = vector.extract_strided_slice %5 {offsets = [0, 0, 4], sizes = [4, 16, 16], strides = [1, 1, 1]} : vector<4x16x20xf32> to vector<4x16x16xf32>
    %cst_5 = arith.constant 0.120078385 : f32
    %22 = vector.broadcast %cst_5 : f32 to vector<4x16x16xf32>
    %23 = arith.mulf %22, %21 : vector<4x16x16xf32>
    %24 = arith.addf %20, %23 : vector<4x16x16xf32>
    %25 = vector.extract_strided_slice %24 {offsets = [0, 2, 0], sizes = [4, 1, 16], strides = [1, 1, 1]} : vector<4x16x16xf32> to vector<4x1x16xf32>
    %26 = vector.extract_strided_slice %24 {offsets = [0, 1, 0], sizes = [4, 1, 16], strides = [1, 1, 1]} : vector<4x16x16xf32> to vector<4x1x16xf32>
    %27 = vector.extract_strided_slice %24 {offsets = [0, 14, 0], sizes = [4, 1, 16], strides = [1, 1, 1]} : vector<4x16x16xf32> to vector<4x1x16xf32>
    %28 = vector.extract_strided_slice %24 {offsets = [0, 13, 0], sizes = [4, 1, 16], strides = [1, 1, 1]} : vector<4x16x16xf32> to vector<4x1x16xf32>
    %29 = tpu.concatenate %25, %26, %24, %27, %28 in 1 : vector<4x1x16xf32>, vector<4x1x16xf32>, vector<4x16x16xf32>, vector<4x1x16xf32>, vector<4x1x16xf32> -> vector<4x20x16xf32>
    %30 = vector.extract_strided_slice %29 {offsets = [0, 0, 0], sizes = [4, 16, 16], strides = [1, 1, 1]} : vector<4x20x16xf32> to vector<4x16x16xf32>
    %cst_6 = arith.constant 0.120078385 : f32
    %31 = vector.broadcast %cst_6 : f32 to vector<4x16x16xf32>
    %32 = arith.mulf %31, %30 : vector<4x16x16xf32>
    %33 = vector.extract_strided_slice %29 {offsets = [0, 1, 0], sizes = [4, 16, 16], strides = [1, 1, 1]} : vector<4x20x16xf32> to vector<4x16x16xf32>
    %cst_7 = arith.constant 0.233880758 : f32
    %34 = vector.broadcast %cst_7 : f32 to vector<4x16x16xf32>
    %35 = arith.mulf %34, %33 : vector<4x16x16xf32>
    %36 = arith.addf %32, %35 : vector<4x16x16xf32>
    %37 = vector.extract_strided_slice %29 {offsets = [0, 2, 0], sizes = [4, 16, 16], strides = [1, 1, 1]} : vector<4x20x16xf32> to vector<4x16x16xf32>
    %cst_8 = arith.constant 0.292081714 : f32
    %38 = vector.broadcast %cst_8 : f32 to vector<4x16x16xf32>
    %39 = arith.mulf %38, %37 : vector<4x16x16xf32>
    %40 = arith.addf %36, %39 : vector<4x16x16xf32>
    %41 = vector.extract_strided_slice %29 {offsets = [0, 3, 0], sizes = [4, 16, 16], strides = [1, 1, 1]} : vector<4x20x16xf32> to vector<4x16x16xf32>
    %cst_9 = arith.constant 0.233880758 : f32
    %42 = vector.broadcast %cst_9 : f32 to vector<4x16x16xf32>
    %43 = arith.mulf %42, %41 : vector<4x16x16xf32>
    %44 = arith.addf %40, %43 : vector<4x16x16xf32>
    %45 = vector.extract_strided_slice %29 {offsets = [0, 4, 0], sizes = [4, 16, 16], strides = [1, 1, 1]} : vector<4x20x16xf32> to vector<4x16x16xf32>
    %cst_10 = arith.constant 0.120078385 : f32
    %46 = vector.broadcast %cst_10 : f32 to vector<4x16x16xf32>
    %47 = arith.mulf %46, %45 : vector<4x16x16xf32>
    %48 = arith.addf %44, %47 : vector<4x16x16xf32>
    %c0_11 = arith.constant 0 : index
    %c0_12 = arith.constant 0 : index
    %c0_13 = arith.constant 0 : index
    %49 = vector.load %arg2[%c0_11, %c0_12, %c0_13] : memref<4x16x16xf32, #tpu.memory_space<vmem>>, vector<4x16x16xf32>
    tpu.vector_store %arg2[%c0_11, %c0_12, %c0_13], %48 {strides = array<i32>} : memref<4x16x16xf32, #tpu.memory_space<vmem>>, vector<4x16x16xf32>,
    return
  }
  func.func @transform_0(%arg0: i32) -> (i32, i32, i32) {
    %c0_i32 = arith.constant 0 : i32
    %c0_i32_0 = arith.constant 0 : i32
    %c0_i32_1 = arith.constant 0 : i32
    return %arg0, %c0_i32, %c0_i32_0 : i32, i32, i32
  }
  func.func @transform_1(%arg0: i32) -> (i32, i32, i32) {
    %c0_i32 = arith.constant 0 : i32
    %c0_i32_0 = arith.constant 0 : i32
    %c0_i32_1 = arith.constant 0 : i32
    return %arg0, %c0_i32, %c0_i32_0 : i32, i32, i32
  }
}

</mosaic_0001>

<bundles_post_ra>
// kernel: tpu_custom_call.1
= control target key start
LH: loop header
LB: loop body
LE: loop exit
PB: predicated region body
PF: predicated region fallthrough
CT: control target
= control target key end

     0   :  { %6 = vsyncpa [#allocation3], 0  ;;  %s1452_s0 = inlined_call_operand.hbm [shape: f32[8,16,16], index: 0, kind: input, shape index: {}]   ;;  %s1453_s1 = inlined_call_operand.hbm [shape: f32[8,16,16], index: 1, kind: output, shape index: {}]  }
   0x1   :  { %8 = vsyncpa [#allocation3 + $0x1], 0 }
   0x2   :  { %9 = vsyncpa [#allocation4], 0 }
   0x3   :  { %11 = vsyncpa [#allocation4 + $0x1], 0  ;;  %s1052_s6 = smov 0   ;;  %s1054_s7 = smov 0  }
   0x4   :  { %s1056_s8 = smov 0   ;;  %s1058_s9 = smov 0  }
   0x5 LB: > { %s1073_s10 = sadd.s32 4294967295, %s1027_s9   ;;  %s854_s11 = sadd.s32 4294967294, %s1027_s9   ;;  %s1027_s9 = sphi %s1058_s9, %s1466_s9   ;;  %s1023_s8 = sphi %s1056_s8, %s1465_s8   ;;  %s1019_s7 = sphi %s1054_s7, %s1464_s7   ;;  %s1015_s6 = sphi %s1052_s6, %s1463_s6  }
   0x6   : > { %s1077_s12 = sadd.s32 1, %s1027_s9   ;;  %s24_s13 = sadd.s32 1, %s1023_s8 }
   0x7   : > { %s21_s14 = ssub.s32 %s1027_s9, %s1077_s12  ;;  %p31_p0 = scmp.ne.s32.totalorder %s1023_s8, %s1019_s7 }
   0x8   : > { %p22_p1 = scmp.eq.s32.totalorder %s21_s14, 0  ;;  %p32_p2 = scmp.eq.s32.totalorder %s1027_s9, 0 }
   0x9   : > { %p37_p3 = scmp.ne.s32.totalorder %s1019_s7, %s1015_s6  ;;  %p38_p4 = scmp.eq.s32.totalorder %s1073_s10, 0 }
   0xa   : > { %s1089_s15 = scalar_select %p22_p1, %s1023_s8, %s24_s13  }
   0xb   : > { %p1091_p5 = por %p32_p2, %p31_p0  ;;  %p1095_p6 = por %p38_p4, %p37_p3 }
   0xc   : > { %p61_p7 = scmp.eq.s32.totalorder %s1073_s10, 1  ;;  %p67_p8 = scmp.eq.s32.totalorder %s854_s11, 1 }
   0xd   : > { %p886_p10 = scmp.lt.s32.totalorder %s1027_s9, 2  ;;  %s87_s20 = sand.u32 1, %s1023_s8  }
   0xe   : > { %p1102_p11 = por %p61_p7, %p31_p0  ;;  %p1106_p12 = por %p67_p8, %p37_p3 }
   0xf   : > { %s871_s21 = sshll.u32 %s1027_s9, 10  ;;  %s857_s22 = sshll.u32 %s87_s20, 6 }
  0x10   : > { %s1457_s18 = scalar_select %p1102_p11, 1, 0 }
  0x11   : > { %s1458_s19 = scalar_select %p1106_p12, 1, 0 }
  0x12   : > { %s1115_s25 = scalar_lea.hbm %s1452_s0, %s871_s21  ;;  %s91_s26 = scalar_lea.vmem [#allocation2], %s857_s22 }
  0x13   : > { %s99_s27 = sshll.u32 %s91_s26, 4  ;;  %p1119_p13 = pnand %p886_p10, %p1091_p5  ;;  %s1123_s27 = int_to_ptr.vmem [resolvable:$true] %s99_s27 }
  0x14   : > { %s1125_s29 = scalar_lea.sflag [#allocation3], %s87_s20  ;;  %s931_s30 = scalar_lea.hbm %s1115_s25, 1024 }
  0x15   : > { %p932_p0 = scmp.ne.s32.totalorder %s1115_s25, %s931_s30  ;;  %p933_p1 = pneg %p1119_p13 }
  0x16   : > { %s936_s4 = scalar_lea.hbm %s1452_s0, 2048  ;;  %p937_p4 = scmp.lt.u32.totalorder %s1115_s25, %s1452_s0 }
  0x17   : > { %p934_p2 = pnand %p933_p1, %p932_p0  ;;  %p938_p5 = scmp.lt.u32.totalorder %s936_s4, %s931_s30 }
  0x18   : > { %p940_p8 = scmp.lt.u32.totalorder %s931_s30, %s1115_s25 }
  0x19   : > { %p935_p3 = pneg %p934_p2  ;;  %p939_p7 = por %p938_p5, %p937_p4 }
  0x1b   : > { %p941_p10 = por %p940_p8, %p939_p7 }
  0x1d   : > { %p942_p9 = pnand %p941_p10, %p935_p3 }
  0x1f   : > { %945 = shalt.err (!%p942_p9)
}
  0x20   : > { %s946_s13 = scalar_lea.vmem %s1123_s27, 1024  ;;  %s1029_s14 = smov [#allocation2]  }
  0x21   : > { %p947_p0 = scmp.ne.s32.totalorder %s1123_s27, %s946_s13  ;;  %s951_s16 = sshll.u32 %s1029_s14, 4  ;;  %s952_s16 = int_to_ptr.vmem [resolvable:$false] %s951_s16 }
  0x22   : > { %s953_s20 = scalar_lea.vmem %s952_s16, 2048  ;;  %p954_p11 = scmp.lt.s32.totalorder %s1123_s27, %s952_s16 }
  0x23   : > { %p949_p2 = pnand %p947_p0, %p933_p1  ;;  %p955_p4 = scmp.lt.s32.totalorder %s953_s20, %s946_s13 }
  0x25   : > { %p950_p12 = pneg %p949_p2  ;;  %p956_p5 = por %p955_p4, %p954_p11 }
  0x27   : > { %p957_p7 = pnand %p956_p5, %p950_p12 }
  0x29   : > { %960 = shalt.err (!%p957_p7)
}
  0x2a   : > { %s1030_s21 = smov 128   ;;  %s1031_s22 = smov 8  }
  0x2b   : > { %881 = dma.hbm_to_vmem [thread:$0]  (!%p1119_p13), %s1115_s25, 1024, %s1123_s27, %s1125_s29, %s1030_s21, %s1030_s21, %s1031_s22  }
  0x2c   : > { %p861_p9 = scmp.ge.s32.totalorder %s1027_s9, 1  ;;  %p107_p1 = scmp.lt.s32.totalorder %s1027_s9, 3 }
  0x2e   : > { %p108_p3 = pnand %p861_p9, %p107_p1 }
  0x2f   : > { %s1156_s23 = sand.u32 (!%p108_p3), 1, %s1019_s7  }
  0x30   : > { %111 = sbr.rel (%p108_p3) target bundleno = 460 (0x1cc), region = 24  ;;  %s862_s24 = sshll.u32 (!%p108_p3), %s1156_s23, 6 }
  0x31   : > { %s114_s26 = scalar_lea.sflag (!%p108_p3), [#allocation3], %s1156_s23  ;;  %s117_s30 = scalar_lea.vmem (!%p108_p3), [#allocation2], %s862_s24 }
  0x37   : > { %1006 = dma.done.wait (%p1095_p6), %s114_s26, 1024  }
  0x38   : > { %1008 = vsyncadd (%p1095_p6), %s114_s26, 4294966272  ;;  %v1166_v0 = vld [vmem:[%s117_s30 + $0x10] sm:$0xff]  ;;  %v1168_v1 = vld [vmem:[%s117_s30] sm:$0xff]  ;;  %s1032_s25 = smov 126   ;;  %s1033_s17 = smov 2   ;;  %vm250_vm0 = vcmask 7168  }
  0x39   : > { %158 = vrot.lane.b32.xlu1 %v1166_v0, %s1032_s25  ;;  %154 = vrot.lane.b32.xlu0 %v1168_v1, %s1032_s25  ;;  %v1174_v2 = vld [vmem:[%s117_s30 + $0x18] sm:$0xff]  ;;  %v1176_v3 = vld [vmem:[%s117_s30 + $0x8] sm:$0xff]  ;;  %s1034_s27 = smov 4   ;;  %s1035_s28 = smov 6   ;;  %vm259_vm1 = vcmask 15360   ;;  %vm268_vm2 = vcmask 146432  }
  0x3a   : > { %v1182_v4 = vld [vmem:[%s117_s30 + $0x28] sm:$0xff]  ;;  %v1184_v5 = vld [vmem:[%s117_s30 + $0x20] sm:$0xff]  ;;  %v1190_v6 = vld [vmem:[%s117_s30 + $0x38] sm:$0xff]  ;;  %vm277_vm3 = vcmask 154624   ;;  %s1036_s29 = smov 127   ;;  %s1037_s2 = smov 125  }
  0x3b   : > { %v1192_v7 = vld [vmem:[%s117_s30 + $0x30] sm:$0xff]  ;;  %s1038_s3 = smov 124   ;;  %vm478_vm4 = vcmask 1041408   ;;  %vm532_vm5 = vcmask 1042432   ;;  %vm519_vm6 = vcmask 1040384   ;;  %vm569_vm7 = vcmask 1046528  }
  0x3c   : > { %vm720_vm8 = vcmask 1043456   ;;  %vm630_vm9 = vcmask 1045504   ;;  %vm667_vm10 = vcmask 1044480   ;;  %vm757_vm11 = vcmask 130048   ;;  %s1335_s4 = scalar_lea.vmem [#allocation5], %s862_s24  ;;  %s873_s5 = sshll.u32 %s1073_s10, 10 }
  0x3d   : > { %160 = vrot.lane.b32.xlu1 %v1174_v2, %s1032_s25  ;;  %156 = vrot.lane.b32.xlu0 %v1176_v3, %s1032_s25  ;;  %s781_s11 = sshll.u32 %s1335_s4, 4  ;;  %s1402_s16 = scalar_lea.hbm %s1453_s1, %s873_s5  ;;  %s1404_s11 = int_to_ptr.vmem [resolvable:$true] %s781_s11 }
  0x3e   : > { %s767_s10 = scalar_lea.sflag [#allocation4], %s1156_s23  ;;  %s961_s20 = scalar_lea.vmem %s1404_s11, 1024 }
  0x3f   : > { %p962_p6 = scmp.ne.s32.totalorder %s1404_s11, %s961_s20  ;;  %p1460_p11 = scmp.ne.s32.totalorder %s1457_s18, 0 }
  0x40   : > { %s1039_s21 = smov [#allocation5]  }
  0x41   : > { %164 = vrot.lane.b32.xlu1 %v1182_v4, %s1032_s25  ;;  %162 = vrot.lane.b32.xlu0 %v1184_v5, %s1032_s25  ;;  %p963_p12 = pnand %p962_p6, %p1460_p11  ;;  %s965_s22 = sshll.u32 %s1039_s21, 4  ;;  %s966_s22 = int_to_ptr.vmem [resolvable:$false] %s965_s22 }
  0x42   : > { %s967_s24 = scalar_lea.vmem %s966_s22, 2048  ;;  %p968_p8 = scmp.lt.s32.totalorder %s1404_s11, %s966_s22 }
  0x43   : > { %p964_p13 = pneg %p963_p12  ;;  %p969_p10 = scmp.lt.s32.totalorder %s967_s24, %s961_s20 }
  0x45   : > { %168 = vrot.lane.b32.xlu1 %v1190_v6, %s1032_s25  ;;  %166 = vrot.lane.b32.xlu0 %v1192_v7, %s1032_s25  ;;  %p970_p0 = por %p969_p10, %p968_p8 }
  0x47   : > { %p971_p2 = pnand %p970_p0, %p964_p13 }
  0x49   : > { %180 = vrot.lane.b32.xlu1 %v1176_v3, %s1033_s17  ;;  %178 = vrot.lane.b32.xlu0 %v1168_v1, %s1033_s17 }
  0x4d   : > { %184 = vrot.lane.b32.xlu1 %v1174_v2, %s1033_s17  ;;  %182 = vrot.lane.b32.xlu0 %v1166_v0, %s1033_s17 }
  0x51   : > { %188 = vrot.lane.b32.xlu1 %v1182_v4, %s1033_s17  ;;  %186 = vrot.lane.b32.xlu0 %v1184_v5, %s1033_s17 }
  0x55   : > { %192 = vrot.lane.b32.xlu1 %v1190_v6, %s1033_s17  ;;  %190 = vrot.lane.b32.xlu0 %v1192_v7, %s1033_s17 }
  0x59   : > { %204 = vrot.lane.b32.xlu1 %v1176_v3, %s1034_s27  ;;  %202 = vrot.lane.b32.xlu0 %v1168_v1, %s1034_s27 }
  0x5d   : > { %208 = vrot.lane.b32.xlu1 %v1174_v2, %s1034_s27  ;;  %206 = vrot.lane.b32.xlu0 %v1166_v0, %s1034_s27 }
  0x61   : > { %212 = vrot.lane.b32.xlu1 %v1182_v4, %s1034_s27  ;;  %210 = vrot.lane.b32.xlu0 %v1184_v5, %s1034_s27 }
  0x65   : > { %216 = vrot.lane.b32.xlu1 %v1190_v6, %s1034_s27  ;;  %214 = vrot.lane.b32.xlu0 %v1192_v7, %s1034_s27 }
  0x69   : > { %228 = vrot.lane.b32.xlu1 %v1176_v3, %s1035_s28  ;;  %226 = vrot.lane.b32.xlu0 %v1168_v1, %s1035_s28 }
  0x6d   : > { %232 = vrot.lane.b32.xlu1 %v1174_v2, %s1035_s28  ;;  %230 = vrot.lane.b32.xlu0 %v1166_v0, %s1035_s28 }
  0x71   : > { %236 = vrot.lane.b32.xlu1 %v1182_v4, %s1035_s28  ;;  %234 = vrot.lane.b32.xlu0 %v1184_v5, %s1035_s28 }
  0x75   : > { %240 = vrot.lane.b32.xlu1 %v1190_v6, %s1035_s28  ;;  %238 = vrot.lane.b32.xlu0 %v1192_v7, %s1035_s28 }
  0xab   : > { %v159_v8 = vpop.permute.xlu1 %158  ;;  %v155_v9 = vpop.permute.xlu0 %154 }
  0xac   : > { %v251_v32 = vsel %vm250_vm0, %v155_v9, %v1168_v1  ;;  %v253_v42 = vsel %vm250_vm0, %v159_v8, %v1166_v0 }
  0xaf   : > { %v161_v10 = vpop.permute.xlu1 %160  ;;  %v157_v11 = vpop.permute.xlu0 %156 }
  0xb0   : > { %v252_v33 = vsel %vm250_vm0, %v157_v11, %v1176_v3  ;;  %v254_v43 = vsel %vm250_vm0, %v161_v10, %v1174_v2 }
  0xb3   : > { %v165_v12 = vpop.permute.xlu1 %164  ;;  %v163_v13 = vpop.permute.xlu0 %162 }
  0xb4   : > { %v256_v54 = vsel %vm250_vm0, %v165_v12, %v1182_v4  ;;  %v255_v55 = vsel %vm250_vm0, %v163_v13, %v1184_v5 }
  0xb7   : > { %v169_v14 = vpop.permute.xlu1 %168  ;;  %v167_v15 = vpop.permute.xlu0 %166 }
  0xb8   : > { %v258_v2 = vsel %vm250_vm0, %v169_v14, %v1190_v6  ;;  %v257_v3 = vsel %vm250_vm0, %v167_v15, %v1192_v7 }
  0xbb   : > { %v181_v16 = vpop.permute.xlu1 %180  ;;  %v179_v17 = vpop.permute.xlu0 %178 }
  0xbc   : > { %v261_v34 = vsel %vm259_vm1, %v252_v33, %v181_v16  ;;  %v260_v35 = vsel %vm259_vm1, %v251_v32, %v179_v17 }
  0xbf   : > { %v185_v18 = vpop.permute.xlu1 %184  ;;  %v183_v19 = vpop.permute.xlu0 %182 }
  0xc0   : > { %v263_v46 = vsel %vm259_vm1, %v254_v43, %v185_v18  ;;  %v262_v47 = vsel %vm259_vm1, %v253_v42, %v183_v19 }
  0xc3   : > { %v189_v20 = vpop.permute.xlu1 %188  ;;  %v187_v21 = vpop.permute.xlu0 %186 }
  0xc4   : > { %v265_v58 = vsel %vm259_vm1, %v256_v54, %v189_v20  ;;  %v264_v59 = vsel %vm259_vm1, %v255_v55, %v187_v21 }
  0xc7   : > { %v193_v22 = vpop.permute.xlu1 %192  ;;  %v191_v23 = vpop.permute.xlu0 %190 }
  0xc8   : > { %v267_v8 = vsel %vm259_vm1, %v258_v2, %v193_v22  ;;  %v266_v9 = vsel %vm259_vm1, %v257_v3, %v191_v23 }
  0xcb   : > { %v205_v24 = vpop.permute.xlu1 %204  ;;  %v203_v25 = vpop.permute.xlu0 %202 }
  0xcc   : > { %v270_v36 = vsel %vm268_vm2, %v261_v34, %v205_v24  ;;  %v269_v37 = vsel %vm268_vm2, %v260_v35, %v203_v25 }
  0xcf   : > { %v209_v26 = vpop.permute.xlu1 %208  ;;  %v207_v27 = vpop.permute.xlu0 %206 }
  0xd0   : > { %v272_v48 = vsel %vm268_vm2, %v263_v46, %v209_v26  ;;  %v271_v49 = vsel %vm268_vm2, %v262_v47, %v207_v27 }
  0xd3   : > { %v213_v28 = vpop.permute.xlu1 %212  ;;  %v211_v29 = vpop.permute.xlu0 %210 }
  0xd4   : > { %v274_v60 = vsel %vm268_vm2, %v265_v58, %v213_v28  ;;  %v273_v61 = vsel %vm268_vm2, %v264_v59, %v211_v29 }
  0xd7   : > { %v217_v30 = vpop.permute.xlu1 %216  ;;  %v215_v31 = vpop.permute.xlu0 %214 }
  0xd8   : > { %v276_v10 = vsel %vm268_vm2, %v267_v8, %v217_v30  ;;  %v275_v11 = vsel %vm268_vm2, %v266_v9, %v215_v31 }
  0xdb   : > { %v229_v38 = vpop.permute.xlu1 %228  ;;  %v227_v39 = vpop.permute.xlu0 %226 }
  0xdc   : > { %v1231_v40 = vsel %vm277_vm3, %v270_v36, %v229_v38  ;;  %v1234_v41 = vsel %vm277_vm3, %v269_v37, %v227_v39 }
  0xdd   : > { %v295_v44 = vmul.f32 0.23388076, %v1231_v40  ;;  %v294_v45 = vmul.f32 0.23388076, %v1234_v41  ;;  %v343_v16 = vmul.f32 0.2920817, %v1231_v40 }
  0xde   : > { %v342_v17 = vmul.f32 0.2920817, %v1234_v41  ;;  %v287_v24 = vmul.f32 0.120078385, %v1231_v40  ;;  %v286_v25 = vmul.f32 0.120078385, %v1234_v41 }
  0xdf   : > { %v233_v50 = vpop.permute.xlu1 %232  ;;  %312 = vrot.lane.b32.xlu1 %v295_v44, %s1036_s29  ;;  %310 = vrot.lane.b32.xlu0 %v294_v45, %s1036_s29  ;;  %v231_v51 = vpop.permute.xlu0 %230 }
  0xe0   : > { %v1249_v52 = vsel %vm277_vm3, %v272_v48, %v233_v50  ;;  %v1252_v53 = vsel %vm277_vm3, %v271_v49, %v231_v51 }
  0xe1   : > { %v297_v56 = vmul.f32 0.23388076, %v1249_v52  ;;  %v296_v57 = vmul.f32 0.23388076, %v1252_v53  ;;  %v345_v18 = vmul.f32 0.2920817, %v1249_v52 }
  0xe2   : > { %v344_v19 = vmul.f32 0.2920817, %v1252_v53  ;;  %v289_v26 = vmul.f32 0.120078385, %v1249_v52  ;;  %v288_v27 = vmul.f32 0.120078385, %v1252_v53 }
  0xe3   : > { %v237_v62 = vpop.permute.xlu1 %236  ;;  %316 = vrot.lane.b32.xlu1 %v297_v56, %s1036_s29  ;;  %314 = vrot.lane.b32.xlu0 %v296_v57, %s1036_s29  ;;  %v235_v63 = vpop.permute.xlu0 %234 }
  0xe4   : > { %v283_v0 = vsel %vm277_vm3, %v274_v60, %v237_v62  ;;  %v282_v1 = vsel %vm277_vm3, %v273_v61, %v235_v63 }
  0xe5   : > { %v299_v4 = vmul.f32 0.23388076, %v283_v0  ;;  %v298_v5 = vmul.f32 0.23388076, %v282_v1  ;;  %v347_v20 = vmul.f32 0.2920817, %v283_v0 }
  0xe6   : > { %v346_v21 = vmul.f32 0.2920817, %v282_v1  ;;  %v291_v28 = vmul.f32 0.120078385, %v283_v0  ;;  %v290_v29 = vmul.f32 0.120078385, %v282_v1 }
  0xe7   : > { %v241_v12 = vpop.permute.xlu1 %240  ;;  %320 = vrot.lane.b32.xlu1 %v299_v4, %s1036_s29  ;;  %318 = vrot.lane.b32.xlu0 %v298_v5, %s1036_s29  ;;  %v239_v13 = vpop.permute.xlu0 %238 }
  0xe8   : > { %v285_v6 = vsel %vm277_vm3, %v276_v10, %v241_v12  ;;  %v284_v7 = vsel %vm277_vm3, %v275_v11, %v239_v13 }
  0xe9   : > { %v301_v14 = vmul.f32 0.23388076, %v285_v6  ;;  %v300_v15 = vmul.f32 0.23388076, %v284_v7  ;;  %v349_v22 = vmul.f32 0.2920817, %v285_v6 }
  0xea   : > { %v348_v23 = vmul.f32 0.2920817, %v284_v7  ;;  %v293_v30 = vmul.f32 0.120078385, %v285_v6  ;;  %v1298_v31 = vmul.f32 0.120078385, %v284_v7 }
  0xeb   : > { %324 = vrot.lane.b32.xlu1 %v301_v14, %s1036_s29  ;;  %322 = vrot.lane.b32.xlu0 %v300_v15, %s1036_s29 }
  0xef   : > { %360 = vrot.lane.b32.xlu1 %v343_v16, %s1032_s25  ;;  %358 = vrot.lane.b32.xlu0 %v342_v17, %s1032_s25 }
  0xf3   : > { %364 = vrot.lane.b32.xlu1 %v345_v18, %s1032_s25  ;;  %362 = vrot.lane.b32.xlu0 %v344_v19, %s1032_s25 }
  0xf7   : > { %368 = vrot.lane.b32.xlu1 %v347_v20, %s1032_s25  ;;  %366 = vrot.lane.b32.xlu0 %v346_v21, %s1032_s25 }
  0xfb   : > { %372 = vrot.lane.b32.xlu1 %v349_v22, %s1032_s25  ;;  %370 = vrot.lane.b32.xlu0 %v348_v23, %s1032_s25 }
  0xff   : > { %392 = vrot.lane.b32.xlu1 %v295_v44, %s1037_s2  ;;  %390 = vrot.lane.b32.xlu0 %v294_v45, %s1037_s2 }
 0x103   : > { %396 = vrot.lane.b32.xlu1 %v297_v56, %s1037_s2  ;;  %394 = vrot.lane.b32.xlu0 %v296_v57, %s1037_s2 }
 0x107   : > { %400 = vrot.lane.b32.xlu1 %v299_v4, %s1037_s2  ;;  %398 = vrot.lane.b32.xlu0 %v298_v5, %s1037_s2 }
 0x10b   : > { %404 = vrot.lane.b32.xlu1 %v301_v14, %s1037_s2  ;;  %402 = vrot.lane.b32.xlu0 %v300_v15, %s1037_s2 }
 0x10f   : > { %432 = vrot.lane.b32.xlu1 %v287_v24, %s1038_s3  ;;  %430 = vrot.lane.b32.xlu0 %v286_v25, %s1038_s3 }
 0x113   : > { %436 = vrot.lane.b32.xlu1 %v289_v26, %s1038_s3  ;;  %434 = vrot.lane.b32.xlu0 %v288_v27, %s1038_s3 }
 0x117   : > { %440 = vrot.lane.b32.xlu1 %v291_v28, %s1038_s3  ;;  %438 = vrot.lane.b32.xlu0 %v290_v29, %s1038_s3 }
 0x11b   : > { %444 = vrot.lane.b32.xlu1 %v293_v30, %s1038_s3  ;;  %442 = vrot.lane.b32.xlu0 %v1298_v31, %s1038_s3 }
 0x151   : > { %v313_v32 = vpop.permute.xlu1 %312  ;;  %v311_v33 = vpop.permute.xlu0 %310 }
 0x152   : > { %v335_v54 = vadd.f32 %v313_v32, %v287_v24  ;;  %v334_v55 = vadd.f32 %v311_v33, %v286_v25 }
 0x155   : > { %v317_v34 = vpop.permute.xlu1 %316  ;;  %v315_v35 = vpop.permute.xlu0 %314 }
 0x156   : > { %v337_v62 = vadd.f32 %v317_v34, %v289_v26  ;;  %v336_v63 = vadd.f32 %v315_v35, %v288_v27 }
 0x159   : > { %v321_v36 = vpop.permute.xlu1 %320  ;;  %v319_v37 = vpop.permute.xlu0 %318 }
 0x15a   : > { %v339_v2 = vadd.f32 %v321_v36, %v291_v28  ;;  %v338_v5 = vadd.f32 %v319_v37, %v290_v29 }
 0x15d   : > { %v325_v38 = vpop.permute.xlu1 %324  ;;  %v1301_v39 = vpop.permute.xlu0 %322 }
 0x15e   : > { %v341_v8 = vadd.f32 %v325_v38, %v293_v30 }
 0x161   : > { %v361_v40 = vpop.permute.xlu1 %360  ;;  %v359_v41 = vpop.permute.xlu0 %358 }
 0x162   : > { %v383_v58 = vadd.f32 %v361_v40, %v335_v54  ;;  %v382_v59 = vadd.f32 %v359_v41, %v334_v55 }
 0x165   : > { %v365_v42 = vpop.permute.xlu1 %364  ;;  %v363_v43 = vpop.permute.xlu0 %362 }
 0x166   : > { %v385_v9 = vadd.f32 %v365_v42, %v337_v62  ;;  %v384_v10 = vadd.f32 %v363_v43, %v336_v63 }
 0x169   : > { %v369_v44 = vpop.permute.xlu1 %368  ;;  %v367_v45 = vpop.permute.xlu0 %366 }
 0x16a   : > { %v387_v7 = vadd.f32 %v369_v44, %v339_v2  ;;  %v386_v14 = vadd.f32 %v367_v45, %v338_v5 }
 0x16d   : > { %v373_v46 = vpop.permute.xlu1 %372  ;;  %v1303_v47 = vpop.permute.xlu0 %370 }
 0x16e   : > { %v389_v15 = vadd.f32 %v373_v46, %v341_v8 }
 0x171   : > { %v393_v48 = vpop.permute.xlu1 %392  ;;  %v391_v49 = vpop.permute.xlu0 %390 }
 0x172   : > { %v415_v60 = vadd.f32 %v393_v48, %v383_v58  ;;  %v414_v61 = vadd.f32 %v391_v49, %v382_v59 }
 0x175   : > { %v397_v50 = vpop.permute.xlu1 %396  ;;  %v395_v51 = vpop.permute.xlu0 %394 }
 0x176   : > { %v417_v18 = vadd.f32 %v397_v50, %v385_v9  ;;  %v416_v19 = vadd.f32 %v395_v51, %v384_v10 }
 0x179   : > { %v401_v52 = vpop.permute.xlu1 %400  ;;  %v399_v53 = vpop.permute.xlu0 %398 }
 0x17a   : > { %v1311_v22 = vadd.f32 %v401_v52, %v387_v7  ;;  %v1316_v32 = vadd.f32 %v399_v53, %v386_v14 }
 0x17d   : > { %v1305_v56 = vpop.permute.xlu1 %404  ;;  %v1307_v57 = vpop.permute.xlu0 %402 }
 0x17e   : > { %v421_v54 = vadd.f32 %v1305_v56, %v389_v15 }
 0x181   : > { %v433_v0 = vpop.permute.xlu1 %432  ;;  %v431_v1 = vpop.permute.xlu0 %430 }
 0x182   : > { %v455_v3 = vadd.f32 %v433_v0, %v415_v60  ;;  %v454_v4 = vadd.f32 %v431_v1, %v414_v61 }
 0x184   : > { %v480_v11 = vrot.slane %v455_v3, 6  ;;  %v503_v12 = vrot.slane %v455_v3, 4  ;;  %v511_v13 = vrot.slane %v455_v3, 2  ;;  %v466_v6 = vrot.slane %v454_v4, 2 }
 0x185   : > { %v479_v16 = vrot.slane %v454_v4, 6  ;;  %v437_v17 = vpop.permute.xlu1 %436  ;;  %v435_v26 = vpop.permute.xlu0 %434 }
 0x186   : > { %v528_v20 = vsel %vm478_vm4, %v480_v11, %v503_v12  ;;  %v520_v21 = vsel %vm519_vm6, %v466_v6, %v454_v4  ;;  %v457_v30 = vadd.f32 %v437_v17, %v417_v18  ;;  %v456_v40 = vadd.f32 %v435_v26, %v416_v19 }
 0x187   : > { %v533_v23 = vsel %vm532_vm5, %v528_v20, %v511_v13  ;;  %v481_v24 = vsel %vm478_vm4, %v479_v16, %v480_v11  ;;  %v524_v25 = vsel %vm478_vm4, %v520_v21, %v479_v16 }
 0x188   : > { %v547_v27 = vmul.f32 0.23388076, %v533_v23  ;;  %v608_v28 = vmul.f32 0.2920817, %v533_v23  ;;  %v704_v29 = vmul.f32 0.120078385, %v533_v23 }
 0x189   : > { %v537_v33 = vmul.f32 0.120078385, %v524_v25  ;;  %v538_v34 = vmul.f32 0.120078385, %v481_v24  ;;  %v545_v35 = vmul.f32 0.23388076, %v524_v25  ;;  %v441_v4 = vpop.permute.xlu1 %440 }
 0x18a   : > { %v573_v36 = vrot.slane %v547_v27, 1  ;;  %v634_v37 = vrot.slane %v608_v28, 2  ;;  %v724_v38 = vrot.slane %v704_v29, 4  ;;  %v546_v41 = vmul.f32 0.23388076, %v481_v24  ;;  %v439_v29 = vpop.permute.xlu0 %438 }
 0x18b   : > { %v570_v42 = vrot.slane %v545_v35, 1  ;;  %v606_v43 = vmul.f32 0.2920817, %v524_v25  ;;  %v668_v44 = vrot.slane %v545_v35, 3  ;;  %v607_v45 = vmul.f32 0.2920817, %v481_v24 }
 0x18c   : > { %v721_v46 = vrot.slane %v537_v33, 4  ;;  %v722_v48 = vrot.slane %v538_v34, 4  ;;  %v483_v49 = vrot.slane %v457_v30, 6  ;;  %v571_v50 = vrot.slane %v546_v41, 1 }
 0x18d   : > { %v631_v51 = vrot.slane %v606_v43, 2  ;;  %v669_v52 = vrot.slane %v546_v41, 3  ;;  %v504_v53 = vrot.slane %v457_v30, 4  ;;  %v671_v55 = vrot.slane %v547_v27, 3 }
 0x18e   : > { %v632_v58 = vrot.slane %v607_v45, 2  ;;  %v512_v59 = vrot.slane %v457_v30, 2  ;;  %v572_v60 = vsel %vm569_vm7, %v570_v42, %v571_v50  ;;  %v574_v61 = vsel %vm569_vm7, %v571_v50, %v573_v36  ;;  %v445_v30 = vpop.permute.xlu1 %444 }
 0x18f   : > { %v723_v62 = vsel %vm720_vm8, %v721_v46, %v722_v48  ;;  %v725_v63 = vsel %vm720_vm8, %v722_v48, %v724_v38  ;;  %v598_v0 = vadd.f32 %v572_v60, %v537_v33  ;;  %v599_v1 = vadd.f32 %v574_v61, %v538_v34 }
 0x190   : > { %v633_v2 = vsel %vm630_vm9, %v631_v51, %v632_v58  ;;  %v670_v3 = vsel %vm667_vm10, %v668_v44, %v669_v52  ;;  %v635_v56 = vsel %vm630_vm9, %v632_v58, %v634_v37  ;;  %v529_v5 = vsel %vm478_vm4, %v483_v49, %v504_v53 }
 0x191   : > { %v467_v8 = vrot.slane %v456_v40, 2  ;;  %v482_v9 = vrot.slane %v456_v40, 6  ;;  %v659_v10 = vadd.f32 %v633_v2, %v598_v0  ;;  %v660_v11 = vadd.f32 %v635_v56, %v599_v1 }
 0x192   : > { %v672_v12 = vsel %vm667_vm10, %v669_v52, %v671_v55  ;;  %v534_v13 = vsel %vm532_vm5, %v529_v5, %v512_v59  ;;  %v459_v36 = vadd.f32 %v441_v4, %v1311_v22  ;;  %v458_v44 = vadd.f32 %v439_v29, %v1316_v32 }
 0x193   : > { %v550_v6 = vmul.f32 0.23388076, %v534_v13  ;;  %v611_v7 = vmul.f32 0.2920817, %v534_v13  ;;  %v705_v14 = vmul.f32 0.120078385, %v534_v13  ;;  %v484_v15 = vsel %vm478_vm4, %v482_v9, %v483_v49 }
 0x194   : > { %v696_v16 = vadd.f32 %v670_v3, %v659_v10  ;;  %v697_v17 = vadd.f32 %v672_v12, %v660_v11  ;;  %v521_v18 = vsel %vm519_vm6, %v467_v8, %v456_v40  ;;  %v540_v19 = vmul.f32 0.120078385, %v484_v15 }
 0x195   : > { %v578_v20 = vrot.slane %v550_v6, 1  ;;  %v639_v21 = vrot.slane %v611_v7, 2  ;;  %v676_v23 = vrot.slane %v550_v6, 3  ;;  %v729_v24 = vrot.slane %v705_v14, 4 }
 0x196   : > { %v749_v25 = vadd.f32 %v723_v62, %v696_v16  ;;  %v750_v26 = vadd.f32 %v725_v63, %v697_v17  ;;  %v525_v27 = vsel %vm478_vm4, %v521_v18, %v482_v9  ;;  %v549_v28 = vmul.f32 0.23388076, %v484_v15 }
 0x197   : > { %v539_v33 = vmul.f32 0.120078385, %v525_v27  ;;  %v548_v34 = vmul.f32 0.23388076, %v525_v27  ;;  %v609_v35 = vmul.f32 0.2920817, %v525_v27  ;;  %v1342_v45 = vadd.f32 %v445_v30, %v421_v54 }
 0x198   : > { %758 = vst.msk [vmem:[%s1335_s4] sm:$0xff] %vm757_vm11, %v749_v25  ;;  %759 = vst.msk [vmem:[%s1335_s4 + $0x8] sm:$0xff] %vm757_vm11, %v750_v26  ;;  %v576_v37 = vrot.slane %v549_v28, 1  ;;  %v610_v38 = vmul.f32 0.2920817, %v484_v15  ;;  %v674_v40 = vrot.slane %v549_v28, 3  ;;  %v340_v17 = vadd.f32 %v1301_v39, %v1298_v31 }
 0x199   : > { %v727_v41 = vrot.slane %v540_v19, 4  ;;  %v575_v42 = vrot.slane %v548_v34, 1  ;;  %v636_v43 = vrot.slane %v609_v35, 2  ;;  %v673_v48 = vrot.slane %v548_v34, 3 }
 0x19a   : > { %v579_v22 = vsel %vm569_vm7, %v576_v37, %v578_v20  ;;  %v637_v46 = vrot.slane %v610_v38, 2  ;;  %v726_v49 = vrot.slane %v539_v33, 4  ;;  %v677_v52 = vsel %vm667_vm10, %v674_v40, %v676_v23 }
 0x19b   : > { %v577_v50 = vsel %vm569_vm7, %v575_v42, %v576_v37  ;;  %v601_v51 = vadd.f32 %v579_v22, %v540_v19  ;;  %v730_v53 = vsel %vm720_vm8, %v727_v41, %v729_v24  ;;  %v486_v32 = vrot.slane %v459_v36, 6  ;;  %v443_v42 = vpop.permute.xlu0 %442 }
 0x19c   : > { %v600_v55 = vadd.f32 %v577_v50, %v539_v33  ;;  %v638_v58 = vsel %vm630_vm9, %v636_v43, %v637_v46  ;;  %v640_v59 = vsel %vm630_vm9, %v637_v46, %v639_v21  ;;  %v505_v60 = vrot.slane %v459_v36, 4 }
 0x19d   : > { %v662_v54 = vadd.f32 %v640_v59, %v601_v51  ;;  %v513_v61 = vrot.slane %v459_v36, 2  ;;  %v468_v62 = vrot.slane %v458_v44, 2  ;;  %v675_v0 = vsel %vm667_vm10, %v673_v48, %v674_v40 }
 0x19e   : > { %v661_v63 = vadd.f32 %v638_v58, %v600_v55  ;;  %v728_v1 = vsel %vm720_vm8, %v726_v49, %v727_v41  ;;  %v485_v2 = vrot.slane %v458_v44, 6  ;;  %v530_v4 = vsel %vm478_vm4, %v486_v32, %v505_v60 }
 0x19f   : > { %v699_v3 = vadd.f32 %v677_v52, %v662_v54  ;;  %v522_v56 = vsel %vm519_vm6, %v468_v62, %v458_v44  ;;  %v489_v5 = vrot.slane %v1342_v45, 6  ;;  %v535_v9 = vsel %vm532_vm5, %v530_v4, %v513_v61 }
 0x1a0   : > { %v698_v8 = vadd.f32 %v675_v0, %v661_v63  ;;  %v487_v10 = vsel %vm478_vm4, %v485_v2, %v486_v32  ;;  %v526_v11 = vsel %vm478_vm4, %v522_v56, %v485_v2  ;;  %v553_v13 = vmul.f32 0.23388076, %v535_v9 }
 0x1a1   : > { %v752_v12 = vadd.f32 %v730_v53, %v699_v3  ;;  %v614_v6 = vmul.f32 0.2920817, %v535_v9  ;;  %v506_v7 = vrot.slane %v1342_v45, 4  ;;  %v551_v15 = vmul.f32 0.23388076, %v526_v11 }
 0x1a2   : > { %v751_v14 = vadd.f32 %v728_v1, %v698_v8  ;;  %v514_v16 = vrot.slane %v1342_v45, 2  ;;  %v706_v18 = vmul.f32 0.120078385, %v535_v9  ;;  %v541_v19 = vmul.f32 0.120078385, %v526_v11 }
 0x1a3   : > { %761 = vst.msk [vmem:[%s1335_s4 + $0x18] sm:$0xff] %vm757_vm11, %v752_v12  ;;  %v542_v20 = vmul.f32 0.120078385, %v487_v10  ;;  %v583_v21 = vrot.slane %v553_v13, 1  ;;  %v552_v23 = vmul.f32 0.23388076, %v487_v10  ;;  %v388_v26 = vadd.f32 %v1303_v47, %v340_v17 }
 0x1a4   : > { %760 = vst.msk [vmem:[%s1335_s4 + $0x10] sm:$0xff] %vm757_vm11, %v751_v14  ;;  %v580_v24 = vrot.slane %v551_v15, 1  ;;  %v612_v25 = vmul.f32 0.2920817, %v526_v11  ;;  %v644_v27 = vrot.slane %v614_v6, 2  ;;  %v531_v29 = vsel %vm478_vm4, %v489_v5, %v506_v7 }
 0x1a5   : > { %v613_v28 = vmul.f32 0.2920817, %v487_v10  ;;  %v681_v31 = vrot.slane %v553_v13, 3  ;;  %v581_v39 = vrot.slane %v552_v23, 1  ;;  %v536_v33 = vsel %vm532_vm5, %v531_v29, %v514_v16 }
 0x1a6   : > { %v641_v30 = vrot.slane %v612_v25, 2  ;;  %v734_v34 = vrot.slane %v706_v18, 4  ;;  %v678_v36 = vrot.slane %v551_v15, 3  ;;  %v731_v37 = vrot.slane %v541_v19, 4 }
 0x1a7   : > { %v642_v35 = vrot.slane %v613_v28, 2  ;;  %v582_v38 = vsel %vm569_vm7, %v580_v24, %v581_v39  ;;  %v584_v40 = vsel %vm569_vm7, %v581_v39, %v583_v21  ;;  %v679_v47 = vrot.slane %v552_v23, 3 }
 0x1a8   : > { %v732_v41 = vrot.slane %v542_v20, 4  ;;  %v420_v43 = vadd.f32 %v1307_v57, %v388_v26  ;;  %v602_v44 = vadd.f32 %v582_v38, %v541_v19  ;;  %v603_v22 = vadd.f32 %v584_v40, %v542_v20 }
 0x1a9   : > { %v556_v46 = vmul.f32 0.23388076, %v536_v33  ;;  %v643_v48 = vsel %vm630_vm9, %v641_v30, %v642_v35  ;;  %v645_v49 = vsel %vm630_vm9, %v642_v35, %v644_v27  ;;  %v617_v50 = vmul.f32 0.2920817, %v536_v33 }
 0x1aa   : > { %v707_v51 = vmul.f32 0.120078385, %v536_v33  ;;  %v663_v52 = vadd.f32 %v643_v48, %v602_v44  ;;  %v664_v53 = vadd.f32 %v645_v49, %v603_v22  ;;  %v460_v55 = vadd.f32 %v443_v42, %v420_v43 }
 0x1ab   : > { %v680_v58 = vsel %vm667_vm10, %v678_v36, %v679_v47  ;;  %v682_v59 = vsel %vm667_vm10, %v679_v47, %v681_v31  ;;  %v733_v32 = vsel %vm720_vm8, %v731_v37, %v732_v41  ;;  %v735_v57 = vsel %vm720_vm8, %v732_v41, %v734_v34 }
 0x1ac   : > { %v700_v54 = vadd.f32 %v680_v58, %v663_v52  ;;  %v701_v60 = vadd.f32 %v682_v59, %v664_v53  ;;  %v469_v61 = vrot.slane %v460_v55, 2  ;;  %v488_v62 = vrot.slane %v460_v55, 6 }
 0x1ad   : > { %v588_v63 = vrot.slane %v556_v46, 1  ;;  %v649_v0 = vrot.slane %v617_v50, 2  ;;  %v686_v1 = vrot.slane %v556_v46, 3  ;;  %v739_v2 = vrot.slane %v707_v51, 4 }
 0x1ae   : > { %v753_v3 = vadd.f32 %v733_v32, %v700_v54  ;;  %v754_v4 = vadd.f32 %v735_v57, %v701_v60  ;;  %v490_v56 = vsel %vm478_vm4, %v488_v62, %v489_v5  ;;  %v523_v8 = vsel %vm519_vm6, %v469_v61, %v460_v55 }
 0x1af   : > { %v527_v9 = vsel %vm478_vm4, %v523_v8, %v488_v62  ;;  %v544_v10 = vmul.f32 0.120078385, %v490_v56  ;;  %v555_v11 = vmul.f32 0.23388076, %v490_v56  ;;  %v616_v12 = vmul.f32 0.2920817, %v490_v56 }
 0x1b0   : > { %762 = vst.msk [vmem:[%s1335_s4 + $0x20] sm:$0xff] %vm757_vm11, %v753_v3  ;;  %763 = vst.msk [vmem:[%s1335_s4 + $0x28] sm:$0xff] %vm757_vm11, %v754_v4  ;;  %v543_v13 = vmul.f32 0.120078385, %v527_v9  ;;  %v554_v6 = vmul.f32 0.23388076, %v527_v9 }
 0x1b1   : > { %v615_v7 = vmul.f32 0.2920817, %v527_v9  ;;  %v586_v14 = vrot.slane %v555_v11, 1  ;;  %v647_v15 = vrot.slane %v616_v12, 2  ;;  %v684_v16 = vrot.slane %v555_v11, 3 }
 0x1b2   : > { %v737_v45 = vrot.slane %v544_v10, 4  ;;  %v585_v17 = vrot.slane %v554_v6, 1  ;;  %v683_v18 = vrot.slane %v554_v6, 3  ;;  %v736_v19 = vrot.slane %v543_v13, 4 }
 0x1b3   : > { %v646_v5 = vrot.slane %v615_v7, 2  ;;  %v589_v20 = vsel %vm569_vm7, %v586_v14, %v588_v63  ;;  %v650_v21 = vsel %vm630_vm9, %v647_v15, %v649_v0  ;;  %v687_v23 = vsel %vm667_vm10, %v684_v16, %v686_v1 }
 0x1b4   : > { %v740_v24 = vsel %vm720_vm8, %v737_v45, %v739_v2  ;;  %v587_v25 = vsel %vm569_vm7, %v585_v17, %v586_v14  ;;  %v605_v26 = vadd.f32 %v589_v20, %v544_v10  ;;  %v685_v28 = vsel %vm667_vm10, %v683_v18, %v684_v16 }
 0x1b5   : > { %v648_v27 = vsel %vm630_vm9, %v646_v5, %v647_v15  ;;  %v604_v29 = vadd.f32 %v587_v25, %v543_v13  ;;  %v738_v31 = vsel %vm720_vm8, %v736_v19, %v737_v45 }
 0x1b6   : > { %v666_v39 = vadd.f32 %v650_v21, %v605_v26 }
 0x1b7   : > { %v665_v30 = vadd.f32 %v648_v27, %v604_v29 }
 0x1b8   : > { %v703_v33 = vadd.f32 %v687_v23, %v666_v39 }
 0x1b9   : > { %v702_v34 = vadd.f32 %v685_v28, %v665_v30 }
 0x1ba   : > { %v756_v35 = vadd.f32 %v740_v24, %v703_v33 }
 0x1bb   : > { %v755_v36 = vadd.f32 %v738_v31, %v702_v34 }
 0x1bc   : > { %765 = vst.msk [vmem:[%s1335_s4 + $0x38] sm:$0xff] %vm757_vm11, %v756_v35 }
 0x1bd   : > { %764 = vst.msk [vmem:[%s1335_s4 + $0x30] sm:$0xff] %vm757_vm11, %v755_v36 }
 0x1be   : > { %974 = shalt.err (!%p971_p2)
}
 0x1bf   : > { %s975_s26 = scalar_lea.hbm %s1402_s16, 1024  ;;  %s979_s17 = scalar_lea.hbm %s1453_s1, 2048 }
 0x1c0   : > { %p976_p4 = scmp.ne.s32.totalorder %s1402_s16, %s975_s26  ;;  %p980_p9 = scmp.lt.u32.totalorder %s1402_s16, %s1453_s1 }
 0x1c1   : > { %p981_p1 = scmp.lt.u32.totalorder %s979_s17, %s975_s26  ;;  %p983_p6 = scmp.lt.u32.totalorder %s975_s26, %s1402_s16 }
 0x1c2   : > { %p977_p5 = pnand %p976_p4, %p1460_p11 }
 0x1c3   : > { %p982_p3 = por %p981_p1, %p980_p9 }
 0x1c4   : > { %p978_p7 = pneg %p977_p5 }
 0x1c5   : > { %p984_p12 = por %p983_p6, %p982_p3 }
 0x1c7   : > { %p985_p13 = pnand %p984_p12, %p978_p7 }
 0x1c9   : > { %988 = shalt.err (!%p985_p13)
}
 0x1ca   : > { %s1040_s29 = smov 128   ;;  %s1041_s2 = smov 8  }
 0x1cb   : > { %876 = dma.vmem_to_hbm [thread:$0]  (%p1460_p11), %s1404_s11, 1024, %s1402_s16, %s767_s10, %s1040_s29, %s1040_s29, %s1041_s2  }
 0x1cc PF: > { %s796_s3 = sand.u32 1, %s1015_s6   ;;  %p1461_p8 = scmp.ne.s32.totalorder %s1458_s19, 0 }
 0x1cd   : > { %p1462_p10 = scmp.ge.s32.totalorder %s1027_s9, 2  ;;  %s797_s4 = scalar_lea.sflag [#allocation4], %s796_s3 }
 0x1cf   : > { %p883_p0 = pnand %p1462_p10, %p1461_p8 }
 0x1d1   : > { %1010 = dma.done.wait (!%p883_p0), %s797_s4, 1024  }
 0x1d2   : > { %1012 = vsyncadd (!%p883_p0), %s797_s4, 4294966272  ;;  %p14_p2 = scmp.ge.s32.totalorder %s1077_s12, 4   ;;  %s1463_s6 = smov %s1019_s7 }
 0x1d3   : > { %s1464_s7 = smov %s1023_s8  ;;  %s1465_s8 = smov %s1089_s15 }
 0x1d4   : > { %s1466_s9 = smov %s1077_s12  ;;  %16 = sbr.rel (!%p14_p2) target bundleno = 5 (0x5), region = 69 }
 0x1db   :  { %802 = vsyncpa [#allocation3], 1 }
 0x1dc   :  { %804 = vsyncpa [#allocation3 + $0x1], 1 }
 0x1dd   :  { %805 = vsyncpa [#allocation4], 1 }
 0x1de   :  { %807 = vsyncpa [#allocation4 + $0x1], 1 }

</bundles_post_ra>
